<compile_context>
chip_gen: v7x
topology: tpu7x:2x2x1
jax: 0.10.0
libtpu: 0.0.40
codegen_flags: <defaults>
</compile_context>

<pallas_src>
import functools
import math

import jax
import jax.numpy as jnp
from jax.experimental import pallas as pl
from jax.experimental.pallas import tpu as pltpu


# ---------------------------------------------------------------------------
# small helpers
# ---------------------------------------------------------------------------
def _round_up(n, m):
    return ((n + m - 1) // m) * m


def _apply_act(x, act):
    # activations evaluated in f32 inside the kernels (v5e has no bf16 VPU/EUP)
    if act is None:
        return x
    if act == "silu":
        return x * jax.nn.sigmoid(x)
    if act == "gelu_tanh":
        return jax.nn.gelu(x, approximate=True)
    raise ValueError(f"unknown activation: {act}")


def _padded_bytes(shape, dtype):
    # physical VMEM footprint of a 2-D tile after (8, 128) layout padding
    r = _round_up(int(shape[0]), 8)
    c = _round_up(int(shape[1]), 128)
    return r * c * jnp.dtype(dtype).itemsize


# ---------------------------------------------------------------------------
# Pallas kernels
# ---------------------------------------------------------------------------
def _linear_kernel(x_ref, w_ref, b_ref, o_ref, *, out_act):
    # y = act(x @ W + b); x arrives f32, cast to bf16 in VMEM (VPU cast hides under DMA),
    # MXU accumulates in f32, bias/activation in f32.
    x = x_ref[...].astype(w_ref.dtype)
    y = jnp.dot(x, w_ref[...], preferred_element_type=jnp.float32)
    y = _apply_act(y + b_ref[...].astype(jnp.float32), out_act)
    o_ref[...] = y.astype(o_ref.dtype)


def _mlp2_kernel(x_ref, w1_ref, b1_ref, w2_ref, b2_ref, o_ref, *, mid_act):
    # y = (act(x @ W1 + b1)) @ W2 + b2   -- fused two-layer MLP (caption projection)
    x = x_ref[...].astype(w1_ref.dtype)
    h = jnp.dot(x, w1_ref[...], preferred_element_type=jnp.float32)
    h = _apply_act(h + b1_ref[...].astype(jnp.float32), mid_act).astype(w2_ref.dtype)
    y = jnp.dot(h, w2_ref[...], preferred_element_type=jnp.float32)
    o_ref[...] = (y + b2_ref[...].astype(jnp.float32)).astype(o_ref.dtype)


# ---------------------------------------------------------------------------
# pallas_call wrapper (row-blocked, parallel grid, resident weights)
# ---------------------------------------------------------------------------
def _rowwise_pallas(kernel_fn, x, params, out_dim, out_dtype, *, block_rows=2048):
    """Run kernel_fn(x_block, *param_blocks, out_block) over large row blocks of x."""
    N, K = x.shape
    # biggest row tile the array allows, but keep >= 2 grid steps so the "parallel"
    # row axis can still be split across v7x's two TensorCores
    bm = min(block_rows, max(_round_up(-(-N // 2), 8), 8))
    grid = (pl.cdiv(N, bm),)          # ragged last block is masked by Pallas (no jnp.pad copy)

    in_specs = [pl.BlockSpec((bm, K), lambda i: (i, 0))]
    in_specs += [pl.BlockSpec(p.shape, lambda i, _n=p.ndim: (0,) * _n) for p in params]
    out_specs = pl.BlockSpec((bm, out_dim), lambda i: (i, 0))

    # VMEM budget: double-buffered x/out row tiles + double-buffered (tiny) invariant params,
    # counted at their (8,128)-padded physical size.
    need = (2 * _padded_bytes((bm, K), x.dtype)
            + 2 * _padded_bytes((bm, out_dim), out_dtype)
            + 2 * sum(_padded_bytes(p.shape, p.dtype) for p in params))
    vmem_limit = int(min(max(2 * need, 16 * 1024 * 1024), 48 * 1024 * 1024))

    return pl.pallas_call(
        kernel_fn,
        out_shape=jax.ShapeDtypeStruct((N, out_dim), out_dtype),
        grid_spec=pl.GridSpec(grid=grid, in_specs=in_specs, out_specs=out_specs),
        compiler_params=pltpu.CompilerParams(
            dimension_semantics=("parallel",),   # no carry -> megacore-shardable
            vmem_limit_bytes=vmem_limit),
    )(x, *params)


def pallas_linear(x, w, b, *, out_act=None, out_dtype, block_rows=2048):
    kernel = functools.partial(_linear_kernel, out_act=out_act)
    return _rowwise_pallas(kernel, x, (w, b), w.shape[1], out_dtype,
                           block_rows=block_rows)


def pallas_mlp2(x, w1, b1, w2, b2, *, mid_act, out_dtype, block_rows=2048):
    kernel = functools.partial(_mlp2_kernel, mid_act=mid_act)
    return _rowwise_pallas(kernel, x, (w1, b1, w2, b2), w2.shape[1], out_dtype,
                           block_rows=block_rows)


# ---------------------------------------------------------------------------
# parameter preparation (cast weights to bf16 ONCE, keep biases f32 as (1, D))
# ---------------------------------------------------------------------------
def prepare_params(params, compute_dtype=jnp.bfloat16):
    prepared = {}
    for k, v in params.items():
        if v.ndim == 2:       # weight matrix -> MXU operand dtype, cast once
            prepared[k] = v.astype(compute_dtype)
        else:                 # bias -> f32 row vector, reshaped once
            prepared[k] = v.astype(jnp.float32).reshape(1, -1)
    return prepared


# ---------------------------------------------------------------------------
# positional / scalar glue (tiny; kept in plain JAX, fp32 as in the module)
# ---------------------------------------------------------------------------
def timestep_sinusoidal(timesteps, num_channels=256, max_period=10000.0):
    """diffusers get_timestep_embedding(flip_sin_to_cos=True, downscale_freq_shift=0)."""
    half = num_channels // 2
    exponent = -math.log(max_period) * jnp.arange(half, dtype=jnp.float32) / half
    freqs = jnp.exp(exponent)
    args = timesteps.astype(jnp.float32)[:, None] * freqs[None, :]
    emb = jnp.concatenate([jnp.sin(args), jnp.cos(args)], axis=-1)
    return jnp.concatenate([emb[:, half:], emb[:, :half]], axis=-1)   # flip sin<->cos


def time_embed_jax(timestep, pp, cd):
    """AdaLayerNormSingle: operates on B rows only -> plain XLA (a pallas_call here is
    pure launch overhead). bf16 matmuls, f32 bias/activation, matching autocast."""
    tsin = timestep_sinusoidal(timestep.reshape(-1)).astype(cd)
    h = jnp.dot(tsin, pp["time_w1"], preferred_element_type=jnp.float32) + pp["time_b1"]
    h = jax.nn.silu(h).astype(cd)
    e = jnp.dot(h, pp["time_w2"], preferred_element_type=jnp.float32) + pp["time_b2"]
    embedded_timestep = e.astype(cd)
    g = jax.nn.silu(e).astype(cd)
    temb = jnp.dot(g, pp["time_w3"], preferred_element_type=jnp.float32) + pp["time_b3"]
    return temb.astype(cd), embedded_timestep


def ltx_rope_freqs(batch_size, num_frames, height, width, dim, rope_scale,
                   patch_size=1, patch_size_t=1, theta=10000.0,
                   base_num_frames=20, base_height=2048, base_width=2048):
    """LTXVideoRotaryPosEmbed.forward (pure positional math, always fp32)."""
    # TODO(synk): at production shapes (large S, D >= 2048) this should be a fused Pallas
    # kernel writing cos/sin tiles directly (the intermediates here are extra HBM passes).
    gf, gh, gw = jnp.meshgrid(jnp.arange(num_frames, dtype=jnp.float32),
                              jnp.arange(height, dtype=jnp.float32),
                              jnp.arange(width, dtype=jnp.float32), indexing="ij")
    grid = jnp.stack([gf, gh, gw], axis=0)                                   # [3,F,H,W]
    scale = jnp.array([rope_scale[0] * patch_size_t / base_num_frames,
                       rope_scale[1] * patch_size / base_height,
                       rope_scale[2] * patch_size / base_width], dtype=jnp.float32)
    grid = grid * scale[:, None, None, None]
    grid = jnp.broadcast_to(grid[None], (batch_size,) + grid.shape)
    grid = grid.reshape(batch_size, 3, -1).transpose(0, 2, 1)                # [B,S,3]

    nf = dim // 6
    freqs = (theta ** jnp.linspace(0.0, 1.0, nf, dtype=jnp.float32)) * (math.pi / 2.0)
    freqs = freqs[None, None, None, :] * (grid[..., None] * 2.0 - 1.0)       # [B,S,3,nf]
    freqs = freqs.transpose(0, 1, 3, 2).reshape(batch_size, grid.shape[1], 3 * nf)

    cos = jnp.repeat(jnp.cos(freqs), 2, axis=-1)
    sin = jnp.repeat(jnp.sin(freqs), 2, axis=-1)
    pad = dim % 6
    if pad:
        cos = jnp.concatenate([jnp.ones_like(cos[..., :pad]), cos], axis=-1)
        sin = jnp.concatenate([jnp.zeros_like(sin[..., :pad]), sin], axis=-1)
    return cos, sin


# ---------------------------------------------------------------------------
# InitialLayer forward
# ---------------------------------------------------------------------------
def initial_layer_forward(pp, inputs, *, num_frames, height, width,
                          rope_interpolation_scale, compute_dtype=jnp.bfloat16,
                          block_rows=2048):
    # num_frames/height/width/rope scales correspond to the .item() scalars in PyTorch.
    (hidden_states, encoder_hidden_states, encoder_attention_mask,
     timestep, target) = inputs
    B, S, C_in = hidden_states.shape
    D = pp["proj_in_w"].shape[1]
    cd = compute_dtype

    # RoPE frequencies (fp32 positional math).
    freqs_cos, freqs_sin = ltx_rope_freqs(B, num_frames, height, width, D,
                                          rope_interpolation_scale)

    # Additive encoder attention mask (follows hidden_states' input dtype, as in PyTorch).
    if encoder_attention_mask is not None and encoder_attention_mask.ndim == 2:
        mask = (1.0 - encoder_attention_mask.astype(hidden_states.dtype)) * -10000.0
        mask = mask[:, None, :]
    else:
        mask = encoder_attention_mask

    # proj_in : Linear(C_in -> D).  Activations stay f32 in HBM; bf16 cast inside the kernel.
    hs = pallas_linear(hidden_states.reshape(B * S, C_in),
                       pp["proj_in_w"], pp["proj_in_b"],
                       out_dtype=cd, block_rows=block_rows).reshape(B, S, D)

    # time_embed : AdaLayerNormSingle (B rows -> plain XLA, no kernel launch overhead).
    temb, embedded_timestep = time_embed_jax(timestep, pp, cd)
    temb = temb.reshape(B, -1, temb.shape[-1])
    embedded_timestep = embedded_timestep.reshape(B, -1, embedded_timestep.shape[-1])

    # caption_projection : Linear -> GELU(tanh) -> Linear (fused Pallas MLP).
    Bc, L, Dc = encoder_hidden_states.shape
    ehs = pallas_mlp2(encoder_hidden_states.reshape(Bc * L, Dc),
                      pp["cap_w1"], pp["cap_b1"], pp["cap_w2"], pp["cap_b2"],
                      mid_act="gelu_tanh", out_dtype=cd,
                      block_rows=block_rows).reshape(B, -1, D)  # PyTorch: .view(batch_size, -1, D)

    # TODO(synk): make_contiguous / tensor.requires_grad_(True) are PyTorch autograd
    # bookkeeping with no JAX equivalent; outputs are returned as-is.
    return (hs, ehs, temb, embedded_timestep, freqs_cos, freqs_sin, mask, target)


# ---------------------------------------------------------------------------
# plain-JAX reference (same bf16/f32 numeric path) for a correctness check
# ---------------------------------------------------------------------------
def _reference_forward(pp, hidden_states, encoder_hidden_states, timestep, cd):
    B, S, C_in = hidden_states.shape
    D = pp["proj_in_w"].shape[1]

    def lin(x, w, b):
        return jnp.dot(x.astype(cd), w, preferred_element_type=jnp.float32) + b

    hs = lin(hidden_states.reshape(B * S, C_in), pp["proj_in_w"],
             pp["proj_in_b"]).astype(cd).reshape(B, S, D)

    temb, embt = time_embed_jax(timestep, pp, cd)
    temb = temb.reshape(B, 1, -1)
    embt = embt.reshape(B, 1, D)

    x = encoder_hidden_states.reshape(-1, encoder_hidden_states.shape[-1])
    h = jax.nn.gelu(lin(x, pp["cap_w1"], pp["cap_b1"]), approximate=True).astype(cd)
    ehs = lin(h, pp["cap_w2"], pp["cap_b2"]).astype(cd).reshape(B, -1, D)
    return hs, ehs, temb, embt


# ---------------------------------------------------------------------------
if __name__ == "__main__":
    key = jax.random.PRNGKey(0)
    ks = jax.random.split(key, 16)

    # Small shapes consistent with the module (lane dims kept multiples of 128).
    B = 2
    in_channels = 32                       # patchified latent channels
    D = 128                                # transformer inner_dim
    num_frames, height, width = 2, 8, 16   # token grid -> S = 256
    S = num_frames * height * width
    L = 128                                # caption tokens
    caption_dim = 64                       # caption feature dim
    rope_interpolation_scale = (1.0, 32.0, 32.0)

    hidden_states = jax.random.normal(ks[0], (B, S, in_channels), dtype=jnp.float32)
    encoder_hidden_states = jax.random.normal(ks[1], (B, L, caption_dim), dtype=jnp.float32)
    encoder_attention_mask = (jax.random.uniform(ks[2], (B, L)) > 0.2).astype(jnp.int32)
    timestep = jax.random.uniform(ks[3], (B,), minval=0.0, maxval=1000.0)
    target = jax.random.normal(ks[4], (B, S, in_channels), dtype=jnp.float32)

    def w(k, shape, scale):
        return jax.random.normal(k, shape, dtype=jnp.float32) * scale

    # weights stored as [in, out] (transposed from PyTorch's Linear [out, in])
    raw_params = {
        "proj_in_w": w(ks[5], (in_channels, D), in_channels ** -0.5),
        "proj_in_b": w(ks[6], (D,), 0.02),
        "time_w1": w(ks[7], (256, D), 256 ** -0.5),
        "time_b1": w(ks[8], (D,), 0.02),
        "time_w2": w(ks[9], (D, D), D ** -0.5),
        "time_b2": w(ks[10], (D,), 0.02),
        "time_w3": w(ks[11], (D, 6 * D), D ** -0.5),
        "time_b3": w(ks[12], (6 * D,), 0.02),
        "cap_w1": w(ks[13], (caption_dim, D), caption_dim ** -0.5),
        "cap_b1": w(ks[14], (D,), 0.02),
        "cap_w2": w(ks[15], (D, D), D ** -0.5),
        "cap_b2": jnp.zeros((D,), jnp.float32),
    }
    params = prepare_params(raw_params)      # bf16 weights / f32 (1,D) biases, cast ONCE

    inputs = (hidden_states, encoder_hidden_states, encoder_attention_mask,
              timestep, target)
    outputs = initial_layer_forward(
        params, inputs, num_frames=num_frames, height=height, width=width,
        rope_interpolation_scale=rope_interpolation_scale)
    outputs = jax.block_until_ready(outputs)

    hs, ehs, temb, embt, fcos, fsin, mask, tgt = outputs
    assert hs.shape == (B, S, D) and ehs.shape == (B, L, D)
    assert temb.shape == (B, 1, 6 * D) and embt.shape == (B, 1, D)
    assert fcos.shape == (B, S, D) and fsin.shape == (B, S, D)
    assert mask.shape == (B, 1, L) and tgt.shape == target.shape

    r_hs, r_ehs, r_temb, r_embt = _reference_forward(
        params, hidden_states, encoder_hidden_states, timestep, jnp.bfloat16)
    for got, ref in ((hs, r_hs), (ehs, r_ehs), (temb, r_temb), (embt, r_embt)):
        assert jnp.allclose(got.astype(jnp.float32), ref.astype(jnp.float32),
                            rtol=5e-2, atol=5e-2)

    print("KERNEL_OK")
</pallas_src>

<mosaic_0001>
module attributes {stable_mosaic.version = 11 : i64} {
  func.func @_linear_kernel(%arg0: i32, %arg1: memref<256x32xf32, #tpu.memory_space<vmem>>, %arg2: memref<32x128xbf16, #tpu.memory_space<vmem>>, %arg3: memref<1x128xf32, #tpu.memory_space<vmem>>, %arg4: memref<256x128xbf16, #tpu.memory_space<vmem>>) attributes {dimension_semantics = [#tpu.dimension_semantics<parallel>], iteration_bounds = array<i64: 2>, scalar_prefetch = 0 : i64, scratch_operands = 0 : i64, tpu.core_type = #tpu.core_type<tc>, window_params = [{transform_indices = @transform_0, window_bounds = array<i64: 256, 32>}, {pipeline_mode = #tpu.pipeline_mode<synchronous>, transform_indices = @transform_1, window_bounds = array<i64: 32, 128>}, {pipeline_mode = #tpu.pipeline_mode<synchronous>, transform_indices = @transform_2, window_bounds = array<i64: 1, 128>}, {transform_indices = @transform_3, window_bounds = array<i64: 256, 128>}]} {
    %c0 = arith.constant 0 : index
    %c0_0 = arith.constant 0 : index
    %0 = vector.load %arg1[%c0, %c0_0] : memref<256x32xf32, #tpu.memory_space<vmem>>, vector<256x32xf32>
    %1 = arith.truncf %0 : vector<256x32xf32> to vector<256x32xbf16>
    %c0_1 = arith.constant 0 : index
    %c0_2 = arith.constant 0 : index
    %2 = vector.load %arg2[%c0_1, %c0_2] : memref<32x128xbf16, #tpu.memory_space<vmem>>, vector<32x128xbf16>
    %cst = arith.constant dense<0.000000e+00> : vector<256x128xf32>
    %3 = tpu.matmul %1, %2, %cst {dimension_numbers = #tpu.dot_dimension_numbers<[1], [0], [0], [1], [0, 0, 1, 1], [], []>} : vector<256x32xbf16>, vector<32x128xbf16>, vector<256x128xf32> -> vector<256x128xf32>
    %c0_3 = arith.constant 0 : index
    %c0_4 = arith.constant 0 : index
    %4 = vector.load %arg3[%c0_3, %c0_4] : memref<1x128xf32, #tpu.memory_space<vmem>>, vector<1x128xf32>
    %5 = vector.broadcast %4 : vector<1x128xf32> to vector<256x128xf32>
    %6 = arith.addf %3, %5 : vector<256x128xf32>
    %7 = arith.truncf %6 : vector<256x128xf32> to vector<256x128xbf16>
    %c0_5 = arith.constant 0 : index
    %c0_6 = arith.constant 0 : index
    %8 = vector.load %arg4[%c0_5, %c0_6] : memref<256x128xbf16, #tpu.memory_space<vmem>>, vector<256x128xbf16>
    tpu.vector_store %arg4[%c0_5, %c0_6], %7 {strides = array<i32>} : memref<256x128xbf16, #tpu.memory_space<vmem>>, vector<256x128xbf16>,
    return
  }
  func.func @transform_0(%arg0: i32) -> (i32, i32) {
    %c0_i32 = arith.constant 0 : i32
    %c0_i32_0 = arith.constant 0 : i32
    return %arg0, %c0_i32 : i32, i32
  }
  func.func @transform_1(%arg0: i32) -> (i32, i32) {
    %c0_i32 = arith.constant 0 : i32
    %c0_i32_0 = arith.constant 0 : i32
    %c0_i32_1 = arith.constant 0 : i32
    return %c0_i32, %c0_i32_0 : i32, i32
  }
  func.func @transform_2(%arg0: i32) -> (i32, i32) {
    %c0_i32 = arith.constant 0 : i32
    %c0_i32_0 = arith.constant 0 : i32
    %c0_i32_1 = arith.constant 0 : i32
    return %c0_i32, %c0_i32_0 : i32, i32
  }
  func.func @transform_3(%arg0: i32) -> (i32, i32) {
    %c0_i32 = arith.constant 0 : i32
    %c0_i32_0 = arith.constant 0 : i32
    return %arg0, %c0_i32 : i32, i32
  }
}

</mosaic_0001>

<bundles_post_ra>
// kernel: tpu_custom_call.1
= control target key start
LH: loop header
LB: loop body
LE: loop exit
PB: predicated region body
PF: predicated region fallthrough
CT: control target
= control target key end

     0   :  { %8 = vsyncpa [#allocation3], 0  ;;  %s1287_s0 = inlined_call_operand.vmem [shape: f32[512,32], index: 0, kind: input, shape index: {}]   ;;  %s1288_s1 = inlined_call_operand.vmem [shape: bf16[32,128], index: 1, kind: input, shape index: {}]   ;;  %s1289_s2 = inlined_call_operand.vmem [shape: f32[1,128], index: 2, kind: input, shape index: {}]   ;;  %s1290_s3 = inlined_call_operand.hbm [shape: bf16[512,128], index: 3, kind: output, shape index: {}]  }
   0x1   :  { %10 = vsyncpa [#allocation3 + $0x1], 0  ;;  %s1069_s12 = smov 0   ;;  %s1071_s13 = smov 0  }
   0x2   :  { %s1073_s14 = smov 0   ;;  %s1075_s15 = smov 0  }
   0x3 LB: > { %s1090_s16 = sadd.s32 4294967295, %s1044_s15   ;;  %s690_s17 = sadd.s32 4294967294, %s1044_s15   ;;  %s1044_s15 = sphi %s1075_s15, %s1296_s15   ;;  %s1040_s14 = sphi %s1073_s14, %s1295_s14   ;;  %s1036_s13 = sphi %s1071_s13, %s1294_s13   ;;  %s1032_s12 = sphi %s1069_s12, %s1293_s12  }
   0x4   : > { %s1094_s18 = sadd.s32 1, %s1044_s15   ;;  %s91_s19 = sadd.s32 1, %s1040_s14 }
   0x5   : > { %s88_s20 = ssub.s32 %s1044_s15, %s1094_s18  ;;  %p101_p0 = scmp.ne.s32.totalorder %s1040_s14, %s1036_s13 }
   0x6   : > { %p89_p1 = scmp.eq.s32.totalorder %s88_s20, 0  ;;  %p102_p2 = scmp.eq.s32.totalorder %s1090_s16, 1 }
   0x7   : > { %p107_p3 = scmp.ne.s32.totalorder %s1036_s13, %s1032_s12  ;;  %p108_p4 = scmp.eq.s32.totalorder %s690_s17, 1 }
   0x8   : > { %s1105_s21 = scalar_select %p89_p1, %s1040_s14, %s91_s19  }
   0x9   : > { %p1107_p5 = por %p102_p2, %p101_p0  ;;  %p1111_p6 = por %p108_p4, %p107_p3 }
   0xa   : > { %p693_p7 = scmp.ge.s32.totalorder %s1044_s15, 1  ;;  %p141_p8 = scmp.lt.s32.totalorder %s1044_s15, 3 }
   0xc   : > { %p142_p9 = pnand %p693_p7, %p141_p8 }
   0xd   : > { %v980_v0 = vld [vmem:[%s1288_s1] sm:$0xff] (!%p142_p9)   ;;  %s695_s26 = sshll.u32 (!%p142_p9), %s1090_s16, 5  ;;  %v981_v1 = vld [vmem:[%s1288_s1 + $0x8] sm:$0xff] (!%p142_p9)   ;;  %vm244_vm0 = vcmask (!%p142_p9), 261120   ;;  %s162_s6 = sand.u32 (!%p142_p9), 1, %s1036_s13  }
   0xe   : > { %145 = sbr.rel (%p142_p9) target bundleno = 287 (0x11f), region = 32  ;;  %p166_p10 = scmp.lt.s32.totalorder (!%p142_p9), %s695_s26, 63  ;;  %899 = vmatprep.subr.bf16.mxu0 (!%p142_p9), %v980_v0  ;;  %935 = vmatprep.subr.bf16.mxu1 (!%p142_p9), %v980_v0  ;;  %v1181_v51 = vld [vmem:[%s1289_s2] ss:$0 sm:$0xff] (!%p142_p9) }
   0xf   : > { %900 = vmatpush3.bf16.msra.mxu0 (!%p142_p9), %v980_v0  ;;  %937 = vmatpush3.bf16.msra.mxu1 (!%p142_p9), %v980_v0  ;;  %s694_s9 = sshll.u32 (!%p142_p9), %s162_s6, 7  ;;  %s785_s11 = sshll.u32 (!%p142_p9), %s1090_s16, 11 }
  0x10   : > { %901 = vmatprep.subr.bf16.mxu0 (!%p142_p9), %v981_v1  ;;  %936 = vmatprep.subr.bf16.mxu1 (!%p142_p9), %v981_v1  ;;  %s1193_s10 = scalar_lea.vmem (!%p142_p9), [#allocation2], %s694_s9  ;;  %s1236_s20 = scalar_lea.hbm (!%p142_p9), %s1290_s3, %s785_s11 }
  0x11   : > { %s628_s17 = sshll.u32 (!%p142_p9), %s1193_s10, 4  ;;  %s1246_s24 = scalar_lea.sflag (!%p142_p9), [#allocation3], %s162_s6  ;;  %s1238_s17 = int_to_ptr.vmem [resolvable:$true] %s628_s17 }
  0x12   : > { %s982_s25 = scalar_lea.vmem (!%p142_p9), %s1238_s17, 2048 }
  0x13   : > { %902 = vmatpush3.bf16.msra.mxu0 (!%p142_p9), %v981_v1  ;;  %938 = vmatpush3.bf16.msra.mxu1 (!%p142_p9), %v981_v1  ;;  %p983_p11 = scmp.ne.s32.totalorder (!%p142_p9), %s1238_s17, %s982_s25 }
  0x15   : > { %s1298_s26 = smov (!%p166_p10, %s695_s26), 63  ;;  %p984_p12 = pnand %p983_p11, %p1107_p5 }
  0x16   : > { %s696_s29 = sshll.u32 %s1298_s26, 3  ;;  %s1046_s26 = smov [#allocation2]  }
  0x17   : > { %s1127_s5 = scalar_lea.vmem %s1287_s0, %s696_s29  ;;  %p985_p13 = pneg %p984_p12 }
  0x18   : > { %v173_v2 = vld [vmem:[%s1127_s5] sm:$0xff]  ;;  %v174_v3 = vld [vmem:[%s1127_s5 + $0x8] sm:$0xff]  ;;  %v175_v7 = vld [vmem:[%s1127_s5 + $0x10] sm:$0xff]  ;;  %s986_s27 = sshll.u32 %s1046_s26, 4  ;;  %s987_s27 = int_to_ptr.vmem [resolvable:$false] %s986_s27 }
  0x19   : > { %v189_v4 = vld [vmem:[%s1127_s5 + $0x80] sm:$0xff]  ;;  %v205_v5 = vpack.c.bf16 %v174_v3, %v173_v2  ;;  %v190_v6 = vld [vmem:[%s1127_s5 + $0x88] sm:$0xff]  ;;  %v176_v8 = vld [vmem:[%s1127_s5 + $0x18] sm:$0xff]  ;;  %s988_s28 = scalar_lea.vmem %s987_s27, 4096  ;;  %p989_p0 = scmp.lt.s32.totalorder %s1238_s17, %s987_s27 }
  0x1a   : > { %v213_v9 = vpack.c.bf16 %v190_v6, %v189_v4  ;;  %v206_v10 = vpack.c.bf16 %v176_v8, %v175_v7  ;;  %v191_v11 = vld [vmem:[%s1127_s5 + $0x90] sm:$0xff]  ;;  %v192_v12 = vld [vmem:[%s1127_s5 + $0x98] sm:$0xff]  ;;  %v177_v13 = vld [vmem:[%s1127_s5 + $0x20] sm:$0xff]  ;;  %p990_p1 = scmp.lt.s32.totalorder %s988_s28, %s982_s25 }
  0x1b   : > { %903 = vmatprep.mubr.msk.bf16.mxu0 %vm244_vm0, %v205_v5  ;;  %v214_v14 = vpack.c.bf16 %v192_v12, %v191_v11  ;;  %v178_v15 = vld [vmem:[%s1127_s5 + $0x28] sm:$0xff]  ;;  %v193_v16 = vld [vmem:[%s1127_s5 + $0xa0] sm:$0xff]  ;;  %v179_v20 = vld [vmem:[%s1127_s5 + $0x30] sm:$0xff] }
  0x1c   : > { %v194_v17 = vld [vmem:[%s1127_s5 + $0xa8] sm:$0xff]  ;;  %919 = vmatprep.mubr.msk.bf16.mxu1 %vm244_vm0, %v213_v9  ;;  %904 = vmatmul.mubr.msk.bf16.vlgmr.msra.gmra.mrb[0].mxu0 %vm244_vm0, %v206_v10  ;;  %v207_v18 = vpack.c.bf16 %v178_v15, %v177_v13  ;;  %v180_v21 = vld [vmem:[%s1127_s5 + $0x38] sm:$0xff]  ;;  %v195_v22 = vld [vmem:[%s1127_s5 + $0xb0] sm:$0xff]  ;;  %p991_p2 = por %p990_p1, %p989_p0 }
  0x1d   : > { %v215_v19 = vpack.c.bf16 %v194_v17, %v193_v16  ;;  %920 = vmatmul.mubr.msk.bf16.vlgmr.msra.gmra.mrb[0].mxu1 %vm244_vm0, %v214_v14  ;;  %v196_v23 = vld [vmem:[%s1127_s5 + $0xb8] sm:$0xff]  ;;  %v181_v24 = vld [vmem:[%s1127_s5 + $0x40] sm:$0xff]  ;;  %v182_v25 = vld [vmem:[%s1127_s5 + $0x48] sm:$0xff]  ;;  %v208_v28 = vpack.c.bf16 %v180_v21, %v179_v20 }
  0x1e   : > { %907 = vmatprep.mubr.msk.bf16.mxu0 %vm244_vm0, %v207_v18  ;;  %v197_v26 = vld [vmem:[%s1127_s5 + $0xc0] sm:$0xff]  ;;  %v198_v27 = vld [vmem:[%s1127_s5 + $0xc8] sm:$0xff]  ;;  %v216_v29 = vpack.c.bf16 %v196_v23, %v195_v22  ;;  %v209_v30 = vpack.c.bf16 %v182_v25, %v181_v24  ;;  %v183_v32 = vld [vmem:[%s1127_s5 + $0x50] sm:$0xff]  ;;  %p992_p3 = pnand %p991_p2, %p985_p13 }
  0x1f   : > { %923 = vmatprep.mubr.msk.bf16.mxu1 %vm244_vm0, %v215_v19  ;;  %v217_v31 = vpack.c.bf16 %v198_v27, %v197_v26  ;;  %v184_v33 = vld [vmem:[%s1127_s5 + $0x58] sm:$0xff]  ;;  %v199_v34 = vld [vmem:[%s1127_s5 + $0xd0] sm:$0xff]  ;;  %v185_v36 = vld [vmem:[%s1127_s5 + $0x60] sm:$0xff] }
  0x20   : > { %v200_v35 = vld [vmem:[%s1127_s5 + $0xd8] sm:$0xff]  ;;  %v186_v37 = vld [vmem:[%s1127_s5 + $0x68] sm:$0xff]  ;;  %v201_v38 = vld [vmem:[%s1127_s5 + $0xe0] sm:$0xff]  ;;  %v210_v40 = vpack.c.bf16 %v184_v33, %v183_v32 }
  0x21   : > { %v202_v39 = vld [vmem:[%s1127_s5 + $0xe8] sm:$0xff]  ;;  %v218_v41 = vpack.c.bf16 %v200_v35, %v199_v34  ;;  %v211_v42 = vpack.c.bf16 %v186_v37, %v185_v36  ;;  %v187_v44 = vld [vmem:[%s1127_s5 + $0x70] sm:$0xff]  ;;  %v188_v45 = vld [vmem:[%s1127_s5 + $0x78] sm:$0xff] }
  0x22   : > { %v219_v43 = vpack.c.bf16 %v202_v39, %v201_v38  ;;  %v203_v46 = vld [vmem:[%s1127_s5 + $0xf0] sm:$0xff]  ;;  %v204_v47 = vld [vmem:[%s1127_s5 + $0xf8] sm:$0xff]  ;;  %v212_v48 = vpack.c.bf16 %v188_v45, %v187_v44 }
  0x23   : > { %v220_v49 = vpack.c.bf16 %v204_v47, %v203_v46 }
  0x24   : > { %908 = vmatmul.mubr.msk.bf16.gmra.mrb[4].mxu0 %vm244_vm0, %v208_v28 }
  0x25   : > { %924 = vmatmul.mubr.msk.bf16.gmra.mrb[4].mxu1 %vm244_vm0, %v216_v29  ;;  %911 = vmatprep.mubr.msk.bf16.mxu0 %vm244_vm0, %v209_v30 }
  0x26   : > { %927 = vmatprep.mubr.msk.bf16.mxu1 %vm244_vm0, %v217_v31 }
  0x2c   : > { %912 = vmatmul.mubr.msk.bf16.gmra.mrb[8].mxu0 %vm244_vm0, %v210_v40 }
  0x2d   : > { %928 = vmatmul.mubr.msk.bf16.gmra.mrb[8].mxu1 %vm244_vm0, %v218_v41  ;;  %915 = vmatprep.mubr.msk.bf16.mxu0 %vm244_vm0, %v211_v42 }
  0x2e   : > { %931 = vmatprep.mubr.msk.bf16.mxu1 %vm244_vm0, %v219_v43 }
  0x34   : > { %916 = vmatmul.mubr.msk.bf16.gmra.mrb[12].mxu0 %vm244_vm0, %v212_v48 }
  0x35   : > { %932 = vmatmul.mubr.msk.bf16.gmra.mrb[12].mxu1 %vm244_vm0, %v220_v49 }
  0xef   : > { %v905_v50 = vpop.f32.mrb[0].mxu0 }
  0xf0   : > { %v921_v52 = vpop.f32.mrb[0].mxu1  ;;  %v327_v53 = vpop.f32.mrb[1].mxu0  ;;  %v336_v56 = vadd.f32 %v905_v50, %v1181_v51 }
  0xf1   : > { %v391_v54 = vpop.f32.mrb[1].mxu1  ;;  %v906_v55 = vpop.f32.mrb[2].mxu0  ;;  %v400_v60 = vadd.f32 %v921_v52, %v1181_v51  ;;  %v328_v61 = vadd.f32 %v1181_v51, %v327_v53 }
  0xf2   : > { %v339_v57 = vadd.f32 %v906_v55, %v1181_v51  ;;  %v922_v58 = vpop.f32.mrb[2].mxu1  ;;  %v330_v59 = vpop.f32.mrb[3].mxu0  ;;  %v392_v1 = vadd.f32 %v1181_v51, %v391_v54 }
  0xf3   : > { %v403_v62 = vadd.f32 %v922_v58, %v1181_v51  ;;  %v331_v63 = vadd.f32 %v1181_v51, %v330_v59  ;;  %v394_v0 = vpop.f32.mrb[3].mxu1 }
  0xf4   : > { %v794_v2 = vpack.c.bf16 %v339_v57, %v336_v56  ;;  %v395_v3 = vadd.f32 %v1181_v51, %v394_v0 }
  0xf5   : > { %v834_v4 = vpack.c.bf16 %v403_v62, %v400_v60  ;;  %v789_v5 = vpack.c.bf16 %v331_v63, %v328_v61 }
  0xf6   : > { %866 = vst [vmem:[%s1193_s10 + $0x8] sm:$0xff] %v794_v2   ;;  %v829_v6 = vpack.c.bf16 %v395_v3, %v392_v1 }
  0xf7   : > { %874 = vst [vmem:[%s1193_s10 + $0x48] sm:$0xff] %v834_v4   ;;  %790 = vst [vmem:[%s1193_s10] sm:$0xff] %v789_v5   ;;  %v909_v7 = vpop.f32.mrb[4].mxu0 }
  0xf8   : > { %873 = vst [vmem:[%s1193_s10 + $0x40] sm:$0xff] %v829_v6   ;;  %v925_v8 = vpop.f32.mrb[4].mxu1  ;;  %v343_v9 = vpop.f32.mrb[5].mxu0  ;;  %v352_v12 = vadd.f32 %v909_v7, %v1181_v51 }
  0xf9   : > { %v407_v10 = vpop.f32.mrb[5].mxu1  ;;  %v910_v11 = vpop.f32.mrb[6].mxu0  ;;  %v416_v16 = vadd.f32 %v925_v8, %v1181_v51  ;;  %v344_v17 = vadd.f32 %v1181_v51, %v343_v9 }
  0xfa   : > { %v355_v13 = vadd.f32 %v910_v11, %v1181_v51  ;;  %v926_v14 = vpop.f32.mrb[6].mxu1  ;;  %v346_v15 = vpop.f32.mrb[7].mxu0  ;;  %v408_v21 = vadd.f32 %v1181_v51, %v407_v10 }
  0xfb   : > { %v419_v18 = vadd.f32 %v926_v14, %v1181_v51  ;;  %v347_v19 = vadd.f32 %v1181_v51, %v346_v15  ;;  %v410_v20 = vpop.f32.mrb[7].mxu1 }
  0xfc   : > { %v804_v22 = vpack.c.bf16 %v355_v13, %v352_v12  ;;  %v411_v23 = vadd.f32 %v1181_v51, %v410_v20 }
  0xfd   : > { %v844_v24 = vpack.c.bf16 %v419_v18, %v416_v16  ;;  %v799_v25 = vpack.c.bf16 %v347_v19, %v344_v17 }
  0xfe   : > { %868 = vst [vmem:[%s1193_s10 + $0x18] sm:$0xff] %v804_v22   ;;  %v839_v26 = vpack.c.bf16 %v411_v23, %v408_v21 }
  0xff   : > { %876 = vst [vmem:[%s1193_s10 + $0x58] sm:$0xff] %v844_v24   ;;  %867 = vst [vmem:[%s1193_s10 + $0x10] sm:$0xff] %v799_v25   ;;  %v913_v27 = vpop.f32.mrb[8].mxu0 }
 0x100   : > { %875 = vst [vmem:[%s1193_s10 + $0x50] sm:$0xff] %v839_v26   ;;  %v929_v28 = vpop.f32.mrb[8].mxu1  ;;  %v359_v29 = vpop.f32.mrb[9].mxu0  ;;  %v368_v32 = vadd.f32 %v913_v27, %v1181_v51 }
 0x101   : > { %v423_v30 = vpop.f32.mrb[9].mxu1  ;;  %v914_v31 = vpop.f32.mrb[10].mxu0  ;;  %v432_v36 = vadd.f32 %v929_v28, %v1181_v51  ;;  %v360_v37 = vadd.f32 %v1181_v51, %v359_v29 }
 0x102   : > { %v371_v33 = vadd.f32 %v914_v31, %v1181_v51  ;;  %v930_v34 = vpop.f32.mrb[10].mxu1  ;;  %v362_v35 = vpop.f32.mrb[11].mxu0  ;;  %v424_v41 = vadd.f32 %v1181_v51, %v423_v30 }
 0x103   : > { %v435_v38 = vadd.f32 %v930_v34, %v1181_v51  ;;  %v363_v39 = vadd.f32 %v1181_v51, %v362_v35  ;;  %v426_v40 = vpop.f32.mrb[11].mxu1 }
 0x104   : > { %v814_v42 = vpack.c.bf16 %v371_v33, %v368_v32  ;;  %v427_v43 = vadd.f32 %v1181_v51, %v426_v40 }
 0x105   : > { %v854_v44 = vpack.c.bf16 %v435_v38, %v432_v36  ;;  %v809_v45 = vpack.c.bf16 %v363_v39, %v360_v37 }
 0x106   : > { %870 = vst [vmem:[%s1193_s10 + $0x28] sm:$0xff] %v814_v42   ;;  %v849_v46 = vpack.c.bf16 %v427_v43, %v424_v41 }
 0x107   : > { %878 = vst [vmem:[%s1193_s10 + $0x68] sm:$0xff] %v854_v44   ;;  %869 = vst [vmem:[%s1193_s10 + $0x20] sm:$0xff] %v809_v45   ;;  %v917_v47 = vpop.f32.mrb[12].mxu0 }
 0x108   : > { %877 = vst [vmem:[%s1193_s10 + $0x60] sm:$0xff] %v849_v46   ;;  %v933_v48 = vpop.f32.mrb[12].mxu1  ;;  %v375_v49 = vpop.f32.mrb[13].mxu0  ;;  %v384_v53 = vadd.f32 %v917_v47, %v1181_v51 }
 0x109   : > { %v439_v50 = vpop.f32.mrb[13].mxu1  ;;  %v918_v52 = vpop.f32.mrb[14].mxu0  ;;  %v448_v57 = vadd.f32 %v933_v48, %v1181_v51  ;;  %v376_v58 = vadd.f32 %v1181_v51, %v375_v49 }
 0x10a   : > { %v387_v54 = vadd.f32 %v918_v52, %v1181_v51  ;;  %v934_v55 = vpop.f32.mrb[14].mxu1  ;;  %v378_v56 = vpop.f32.mrb[15].mxu0  ;;  %v440_v62 = vadd.f32 %v1181_v51, %v439_v50 }
 0x10b   : > { %v451_v59 = vadd.f32 %v934_v55, %v1181_v51  ;;  %v379_v60 = vadd.f32 %v1181_v51, %v378_v56  ;;  %v442_v61 = vpop.f32.mrb[15].mxu1 }
 0x10c   : > { %v824_v63 = vpack.c.bf16 %v387_v54, %v384_v53  ;;  %v443_v0 = vadd.f32 %v1181_v51, %v442_v61 }
 0x10d   : > { %v864_v1 = vpack.c.bf16 %v451_v59, %v448_v57  ;;  %v819_v2 = vpack.c.bf16 %v379_v60, %v376_v58 }
 0x10e   : > { %872 = vst [vmem:[%s1193_s10 + $0x38] sm:$0xff] %v824_v63   ;;  %v859_v3 = vpack.c.bf16 %v443_v0, %v440_v62 }
 0x10f   : > { %880 = vst [vmem:[%s1193_s10 + $0x78] sm:$0xff] %v864_v1   ;;  %871 = vst [vmem:[%s1193_s10 + $0x30] sm:$0xff] %v819_v2  }
 0x110   : > { %879 = vst [vmem:[%s1193_s10 + $0x70] sm:$0xff] %v859_v3  }
 0x111   : > { %995 = shalt.err (!%p992_p3)
}
 0x112   : > { %s996_s29 = scalar_lea.hbm %s1236_s20, 2048  ;;  %s1000_s5 = scalar_lea.hbm %s1290_s3, 4096 }
 0x113   : > { %p997_p4 = scmp.ne.s32.totalorder %s1236_s20, %s996_s29  ;;  %p1001_p9 = scmp.lt.u32.totalorder %s1236_s20, %s1290_s3 }
 0x114   : > { %p1002_p10 = scmp.lt.u32.totalorder %s1000_s5, %s996_s29  ;;  %p1004_p12 = scmp.lt.u32.totalorder %s996_s29, %s1236_s20 }
 0x115   : > { %p998_p7 = pnand %p997_p4, %p1107_p5 }
 0x116   : > { %p1003_p11 = por %p1002_p10, %p1001_p9 }
 0x117   : > { %p999_p8 = pneg %p998_p7 }
 0x118   : > { %p1005_p13 = por %p1004_p12, %p1003_p11 }
 0x11a   : > { %p1006_p0 = pnand %p1005_p13, %p999_p8 }
 0x11c   : > { %1009 = shalt.err (!%p1006_p0)
}
 0x11d   : > { %s1047_s8 = smov 64   ;;  %s1048_s9 = smov 4  }
 0x11e   : > { %939 = dma.vmem_to_hbm [thread:$0]  (%p1107_p5), %s1238_s17, 2048, %s1236_s20, %s1246_s24, %s1047_s8, %s1047_s8, %s1048_s9  }
 0x11f PF: > { %p945_p1 = scmp.ge.s32.totalorder %s1044_s15, 2  ;;  %s643_s10 = sand.u32 1, %s1032_s12  }
 0x120   : > { %s644_s11 = scalar_lea.sflag [#allocation3], %s643_s10 }
 0x121   : > { %p942_p2 = pnand %p945_p1, %p1111_p6 }
 0x123   : > { %1027 = dma.done.wait (!%p942_p2), %s644_s11, 2048  }
 0x124   : > { %1029 = vsyncadd (!%p942_p2), %s644_s11, 4294965248  ;;  %p13_p3 = scmp.ge.s32.totalorder %s1094_s18, 4   ;;  %s1293_s12 = smov %s1036_s13 }
 0x125   : > { %s1294_s13 = smov %s1040_s14  ;;  %s1295_s14 = smov %s1105_s21 }
 0x126   : > { %s1296_s15 = smov %s1094_s18  ;;  %15 = sbr.rel (!%p13_p3) target bundleno = 3 (0x3), region = 67 }
 0x12d   :  { %649 = vsyncpa [#allocation3], 1 }
 0x12e   :  { %651 = vsyncpa [#allocation3 + $0x1], 1 }

</bundles_post_ra>
